<compile_context>
chip_gen: v5e
topology: v5e:2x2
jax: 0.10.0
libtpu: 0.0.40
codegen_flags: <defaults>
</compile_context>

<pallas_src>
import numpy as np
import jax
import jax.numpy as jnp
from jax.experimental import pallas as pl
from jax.experimental.pallas import tpu as pltpu

# --- PW92 unpolarized correlation constants (ec0 branch) ---
_A, _a1 = 0.031091, 0.21370
_b1, _b2, _b3, _b4 = 7.5957, 3.5876, 1.6382, 0.49294
_RS_PREF = 4.0 * np.pi / 3.0

_LANES = 128
_MAX_BR = 2048      # rows per block -> (2048,128) f32 = 1 MiB, x2 buffers = 2 MiB
_P = 2              # reduction shards (maps onto v7x's 2 TensorCores)


def _pw92_ec_unpolarized(rs):
    """PW92 correlation energy per electron, zeta = 0 (pure-JAX reference)."""
    srs = jnp.sqrt(rs)
    den = 2.0 * _A * (_b1 * srs + _b2 * rs + _b3 * rs * srs + _b4 * rs * rs)
    return -2.0 * _A * (1.0 + _a1 * rs) * jnp.log(1.0 + 1.0 / den)


def _lda_energy_kernel(n_ref, out_ref, acc_ref):
    i = pl.program_id(1)

    @pl.when(i == 0)
    def _():
        acc_ref[...] = jnp.zeros_like(acc_ref)

    n = n_ref[...]                                  # (BR, 128) density tile
    # Clamp n <= 0 (including the zero padding and any zero-density grid
    # points) so log/exp stay finite; the n -> 0 limit of n*ec is 0.
    n_safe = jnp.maximum(n, 1e-30)
    # sqrt(rs) = (4*pi/3 * n)^(-1/6) via one log + one exp (EUP);
    # rs = srs^2 on the VPU (eliminates a separate sqrt).
    srs = jnp.exp((-1.0 / 6.0) * jnp.log(_RS_PREF * n_safe))
    rs = srs * srs
    # PW92 ec0 denominator, Horner-factored in srs (pure VALU):
    #   den = 2A * (b1*srs + b2*rs + b3*rs*srs + b4*rs^2)
    den = (2.0 * _A) * srs * (_b1 + srs * (_b2 + srs * (_b3 + srs * _b4)))
    ec = (-2.0 * _A) * (1.0 + _a1 * rs) * jnp.log(1.0 + 1.0 / den)
    # Multiply by the *unclamped* n: padding rows (n == 0) contribute exactly
    # zero, so no mask stream is needed.  Reduce over sublanes only.
    acc_ref[...] += jnp.sum(n * ec, axis=0, keepdims=True)     # (1, 128)

    @pl.when(i == pl.num_programs(1) - 1)
    def _():
        out_ref[...] = acc_ref[...]


def spin_unpolarized_energy(n, sigma=None, lap=None, tau=None,
                            requires_grad=False, scale_factor=1.0):
    """E = sum(n[0] * ec_PW92(rs(n[0]))) * scale_factor, computed in Pallas."""
    # TODO(synk): requires_grad / E.backward() (dE/dn) is not implemented;
    #             only the forward scalar energy is computed here.
    del sigma, lap, tau  # unused by LDA (matches torch module behaviour)

    n_tot = jnp.asarray(n, jnp.float32)[0].reshape(-1)
    N = n_tot.shape[0]

    rows8 = -(-N // _LANES)             # rows of 128 lanes
    rows8 = -(-rows8 // 8) * 8          # pad rows to a multiple of 8 sublanes
    BR = min(_MAX_BR, rows8)            # rows per grid block (multiple of 8)
    nblk = -(-rows8 // BR)              # number of (BR, 128) blocks
    nblk = -(-nblk // _P) * _P          # split evenly over the P shards
    G = nblk // _P                      # inner (reduction) grid extent

    total = nblk * BR * _LANES
    # Zero padding contributes exactly 0 inside the kernel (see clamp above).
    n_pad = jnp.pad(n_tot, (0, total - N))
    n2d = n_pad.reshape(nblk * BR, _LANES)

    partials = pl.pallas_call(
        _lda_energy_kernel,
        out_shape=jax.ShapeDtypeStruct((1, _P * _LANES), jnp.float32),
        grid_spec=pltpu.PrefetchScalarGridSpec(
            num_scalar_prefetch=0,
            grid=(_P, G),
            in_specs=[
                pl.BlockSpec((BR, _LANES), lambda p, i: (p * G + i, 0)),
            ],
            out_specs=pl.BlockSpec((1, _LANES), lambda p, i: (0, p)),
            scratch_shapes=[pltpu.VMEM((1, _LANES), jnp.float32)],
        ),
        compiler_params=pltpu.CompilerParams(
            dimension_semantics=("parallel", "arbitrary")),
    )(n2d)
    # Single cross-lane reduction of the per-shard lane partials, then scale.
    return jnp.sum(partials) * jnp.float32(scale_factor)


if __name__ == "__main__":
    key = jax.random.PRNGKey(0)
    # n: (n_spins=1, grid 4x16x16) strictly-positive electron density
    shape = (1, 4, 16, 16)
    n = jnp.abs(jax.random.normal(key, shape, dtype=jnp.float32)) * 0.5 + 0.05
    sigma = jnp.zeros(shape, jnp.float32)   # unused by LDA
    lap = jnp.zeros(shape, jnp.float32)     # unused by LDA
    tau = jnp.zeros(shape, jnp.float32)     # unused by LDA
    scale_factor = 0.5

    E = spin_unpolarized_energy(n, sigma, lap, tau,
                                requires_grad=False,
                                scale_factor=scale_factor)
    E = jax.block_until_ready(E)

    # Pure-JAX reference for a silent correctness check.
    n_tot = n[0]
    rs_ref = (4.0 * np.pi / 3.0 * n_tot) ** (-1.0 / 3.0)
    E_ref = jnp.sum(n_tot * _pw92_ec_unpolarized(rs_ref)) * scale_factor
    np.testing.assert_allclose(float(E), float(E_ref), rtol=1e-5, atol=1e-6)

    print("KERNEL_OK")
</pallas_src>

<mosaic_0001>
module attributes {stable_mosaic.version = 11 : i64} {
  func.func @_lda_energy_kernel(%arg0: i32, %arg1: i32, %arg2: memref<8x128xf32, #tpu.memory_space<vmem>>, %arg3: memref<1x128xf32, #tpu.memory_space<vmem>>, %arg4: memref<1x128xf32, #tpu.memory_space<vmem>>) attributes {dimension_semantics = [#tpu.dimension_semantics<parallel>, #tpu.dimension_semantics<arbitrary>], iteration_bounds = array<i64: 2, 1>, scalar_prefetch = 0 : i64, scratch_operands = 1 : i64, tpu.core_type = #tpu.core_type<tc>, window_params = [{transform_indices = @transform_0, window_bounds = array<i64: 8, 128>}, {transform_indices = @transform_1, window_bounds = array<i64: 1, 128>}]} {
    %c0_i32 = arith.constant 0 : i32
    %0 = arith.cmpi eq, %arg1, %c0_i32 : i32
    %1 = arith.extui %0 : i1 to i32
    %c0_i32_0 = arith.constant 0 : i32
    %2 = arith.cmpi ne, %1, %c0_i32_0 : i32
    scf.if %2 {
      %cst_21 = arith.constant 0.000000e+00 : f32
      %47 = vector.broadcast %cst_21 : f32 to vector<1x128xf32>
      %c0_22 = arith.constant 0 : index
      %c0_23 = arith.constant 0 : index
      %48 = vector.load %arg4[%c0_22, %c0_23] : memref<1x128xf32, #tpu.memory_space<vmem>>, vector<1x128xf32>
      tpu.vector_store %arg4[%c0_22, %c0_23], %47 {strides = array<i32>} : memref<1x128xf32, #tpu.memory_space<vmem>>, vector<1x128xf32>,
    } else {
    }
    %c0 = arith.constant 0 : index
    %c0_1 = arith.constant 0 : index
    %3 = vector.load %arg2[%c0, %c0_1] : memref<8x128xf32, #tpu.memory_space<vmem>>, vector<8x128xf32>
    %cst = arith.constant 1.000000e-30 : f32
    %4 = vector.broadcast %cst : f32 to vector<8x128xf32>
    %5 = arith.maximumf %3, %4 : vector<8x128xf32>
    %cst_2 = arith.constant 4.18879032 : f32
    %6 = vector.broadcast %cst_2 : f32 to vector<8x128xf32>
    %7 = arith.mulf %6, %5 : vector<8x128xf32>
    %8 = math.log %7 : vector<8x128xf32>
    %cst_3 = arith.constant -0.166666672 : f32
    %9 = vector.broadcast %cst_3 : f32 to vector<8x128xf32>
    %10 = arith.mulf %9, %8 : vector<8x128xf32>
    %11 = math.exp %10 : vector<8x128xf32>
    %12 = arith.mulf %11, %11 : vector<8x128xf32>
    %cst_4 = arith.constant 6.218200e-02 : f32
    %13 = vector.broadcast %cst_4 : f32 to vector<8x128xf32>
    %14 = arith.mulf %13, %11 : vector<8x128xf32>
    %cst_5 = arith.constant 4.929400e-01 : f32
    %15 = vector.broadcast %cst_5 : f32 to vector<8x128xf32>
    %16 = arith.mulf %11, %15 : vector<8x128xf32>
    %cst_6 = arith.constant 1.638200e+00 : f32
    %17 = vector.broadcast %cst_6 : f32 to vector<8x128xf32>
    %18 = arith.addf %17, %16 : vector<8x128xf32>
    %19 = arith.mulf %11, %18 : vector<8x128xf32>
    %cst_7 = arith.constant 3.587600e+00 : f32
    %20 = vector.broadcast %cst_7 : f32 to vector<8x128xf32>
    %21 = arith.addf %20, %19 : vector<8x128xf32>
    %22 = arith.mulf %11, %21 : vector<8x128xf32>
    %cst_8 = arith.constant 7.595700e+00 : f32
    %23 = vector.broadcast %cst_8 : f32 to vector<8x128xf32>
    %24 = arith.addf %23, %22 : vector<8x128xf32>
    %25 = arith.mulf %14, %24 : vector<8x128xf32>
    %cst_9 = arith.constant 2.137000e-01 : f32
    %26 = vector.broadcast %cst_9 : f32 to vector<8x128xf32>
    %27 = arith.mulf %26, %12 : vector<8x128xf32>
    %cst_10 = arith.constant 1.000000e+00 : f32
    %28 = vector.broadcast %cst_10 : f32 to vector<8x128xf32>
    %29 = arith.addf %28, %27 : vector<8x128xf32>
    %cst_11 = arith.constant -6.218200e-02 : f32
    %30 = vector.broadcast %cst_11 : f32 to vector<8x128xf32>
    %31 = arith.mulf %30, %29 : vector<8x128xf32>
    %cst_12 = arith.constant 1.000000e+00 : f32
    %32 = vector.broadcast %cst_12 : f32 to vector<8x128xf32>
    %33 = arith.divf %32, %25 : vector<8x128xf32>
    %cst_13 = arith.constant 1.000000e+00 : f32
    %34 = vector.broadcast %cst_13 : f32 to vector<8x128xf32>
    %35 = arith.addf %34, %33 : vector<8x128xf32>
    %36 = math.log %35 : vector<8x128xf32>
    %37 = arith.mulf %31, %36 : vector<8x128xf32>
    %c0_14 = arith.constant 0 : index
    %c0_15 = arith.constant 0 : index
    %38 = vector.load %arg4[%c0_14, %c0_15] : memref<1x128xf32, #tpu.memory_space<vmem>>, vector<1x128xf32>
    %39 = arith.mulf %3, %37 : vector<8x128xf32>
    %cst_16 = arith.constant dense<0.000000e+00> : vector<128xf32>
    %40 = vector.multi_reduction <add>, %39, %cst_16 [0] : vector<8x128xf32> to vector<128xf32>
    %41 = vector.shape_cast %40 : vector<128xf32> to vector<1x128xf32>
    %42 = arith.addf %38, %41 : vector<1x128xf32>
    %c0_17 = arith.constant 0 : index
    %c0_18 = arith.constant 0 : index
    %43 = vector.load %arg4[%c0_17, %c0_18] : memref<1x128xf32, #tpu.memory_space<vmem>>, vector<1x128xf32>
    tpu.vector_store %arg4[%c0_17, %c0_18], %42 {strides = array<i32>} : memref<1x128xf32, #tpu.memory_space<vmem>>, vector<1x128xf32>,
    %c0_i32_19 = arith.constant 0 : i32
    %44 = arith.cmpi eq, %arg1, %c0_i32_19 : i32
    %45 = arith.extui %44 : i1 to i32
    %c0_i32_20 = arith.constant 0 : i32
    %46 = arith.cmpi ne, %45, %c0_i32_20 : i32
    scf.if %46 {
      %c0_21 = arith.constant 0 : index
      %c0_22 = arith.constant 0 : index
      %47 = vector.load %arg4[%c0_21, %c0_22] : memref<1x128xf32, #tpu.memory_space<vmem>>, vector<1x128xf32>
      %c0_23 = arith.constant 0 : index
      %c0_24 = arith.constant 0 : index
      %48 = vector.load %arg3[%c0_23, %c0_24] : memref<1x128xf32, #tpu.memory_space<vmem>>, vector<1x128xf32>
      tpu.vector_store %arg3[%c0_23, %c0_24], %47 {strides = array<i32>} : memref<1x128xf32, #tpu.memory_space<vmem>>, vector<1x128xf32>,
    } else {
    }
    return
  }
  func.func @transform_0(%arg0: i32, %arg1: i32) -> (i32, i32) {
    %c1_i32 = arith.constant 1 : i32
    %0 = arith.muli %arg0, %c1_i32 : i32
    %1 = arith.addi %0, %arg1 : i32
    %c0_i32 = arith.constant 0 : i32
    %c0_i32_0 = arith.constant 0 : i32
    return %1, %c0_i32 : i32, i32
  }
  func.func @transform_1(%arg0: i32, %arg1: i32) -> (i32, i32) {
    %c0_i32 = arith.constant 0 : i32
    %c0_i32_0 = arith.constant 0 : i32
    return %c0_i32, %arg0 : i32, i32
  }
}

</mosaic_0001>

<bundles_post_ra>
// kernel: tpu_custom_call.1
= control target key start
LH: loop header
LB: loop body
LE: loop exit
PB: predicated region body
PF: predicated region fallthrough
CT: control target
= control target key end

     0   :  { %6 = vsyncpa [#allocation4], 0  ;;  %s623_s0 = inlined_call_operand.hbm [shape: f32[16,128], index: 0, kind: input, shape index: {}]   ;;  %s624_s1 = inlined_call_operand.hbm [shape: f32[1,256], index: 1, kind: output, shape index: {}]  }
   0x1   :  { %8 = vsyncpa [#allocation4 + $0x1], 0 }
   0x2   :  { %9 = vsyncpa [#allocation5], 0 }
   0x3   :  { %11 = vsyncpa [#allocation5 + $0x1], 0  ;;  %s502_s6 = smov 0   ;;  %s504_s7 = smov 0  }
   0x4   :  { %s506_s8 = smov 0   ;;  %s508_s9 = smov 0  }
   0x5   :  { %s510_s10 = smov 0   ;;  %s512_s11 = smov 0  }
   0x6 LB: > { %s296_s12 = sadd.s32 4294967295, %s489_s11   ;;  %s297_s13 = sadd.s32 4294967294, %s489_s11   ;;  %s489_s11 = sphi %s512_s11, %s17_s11   ;;  %s485_s10 = sphi %s510_s10, %s633_s10   ;;  %s481_s9 = sphi %s508_s9, %s632_s9   ;;  %s477_s8 = sphi %s506_s8, %s631_s8   ;;  %s473_s7 = sphi %s504_s7, %s630_s7   ;;  %s469_s6 = sphi %s502_s6, %s629_s6  }
   0x7   : > { %s29_s14 = sadd.s32 1, %s485_s10  ;;  %s38_s15 = sadd.s32 1, %s477_s8 }
   0x8   : > { %p31_p0 = scmp.ge.s32.totalorder %s29_s14, 2  ;;  %p45_p1 = scmp.ne.s32.totalorder %s477_s8, %s473_s7 }
   0x9   : > { %p46_p2 = scmp.eq.s32.totalorder %s489_s11, 0  ;;  %p51_p3 = scmp.ne.s32.totalorder %s473_s7, %s469_s6 }
   0xa   : > { %s635_s14 = smov (%p31_p0, %s29_s14), 0  ;;  %p52_p5 = scmp.eq.s32.totalorder %s296_s12, 0 }
   0xb   : > { %p543_p4 = por %p46_p2, %p45_p1  ;;  %s35_s17 = ssub.s32 %s485_s10, %s635_s14 }
   0xc   : > { %p75_p6 = scmp.eq.s32.totalorder %s296_s12, 1  ;;  %p36_p7 = scmp.eq.s32.totalorder %s35_s17, 0 }
   0xd   : > { %p549_p8 = por %p52_p5, %p51_p3  ;;  %p81_p10 = scmp.eq.s32.totalorder %s297_s13, 1 }
   0xe   : > { %p553_p9 = por %p75_p6, %p45_p1  ;;  %p299_p12 = scmp.ge.s32.totalorder %s489_s11, 2 }
   0xf   : > { %s558_s20 = scalar_select %p36_p7, %s477_s8, %s38_s15  }
  0x10   : > { %p560_p11 = por %p81_p10, %p51_p3  ;;  %p318_p13 = scmp.lt.s32.totalorder %s489_s11, 2 }
  0x11   : > { %s101_s22 = sand.u32 1, %s477_s8   ;;  %s301_s24 = sshll.u32 %s485_s10, 3 }
  0x12   : > { %s300_s23 = sshll.u32 %s101_s22, 3  ;;  %s110_s27 = scalar_lea.hbm %s623_s0, %s301_s24 }
  0x13   : > { %s105_s28 = scalar_lea.vmem [#allocation3], %s300_s23  ;;  %s112_s30 = sshll.u32 %s110_s27, 4  ;;  %s113_s30 = int_to_ptr.hbm [resolvable:$true] %s112_s30 }
  0x14   : > { %s114_s29 = sshll.u32 %s105_s28, 4  ;;  %p311_p0 = pnand %p318_p13, %p543_p4  ;;  %s115_s29 = int_to_ptr.vmem [resolvable:$true] %s114_s29 }
  0x15   : > { %p302_p1 = scmp.ge.s32.totalorder %s489_s11, 1  ;;  %p119_p2 = scmp.lt.s32.totalorder %s489_s11, 3 }
  0x16   : > { %s102_s2 = scalar_lea.sflag [#allocation4], %s101_s22 }
  0x17   : > { %313 = dma.hbm_to_vmem [thread:$0]  (!%p311_p0), %s113_s30, 128, %s115_s29, %s102_s2  }
  0x18   : > { %p120_p3 = pnand %p302_p1, %p119_p2 }
  0x19   : > { %s576_s3 = sand.u32 (!%p120_p3), 1, %s473_s7  }
  0x1a   : > { %123 = sbr.rel (%p120_p3) target bundleno = 128 (0x80), region = 24  ;;  %s303_s4 = sshll.u32 (!%p120_p3), %s576_s3, 3 }
  0x1b   : > { %s126_s5 = scalar_lea.sflag (!%p120_p3), [#allocation4], %s576_s3  ;;  %s129_s12 = scalar_lea.vmem (!%p120_p3), [#allocation3], %s303_s4 }
  0x1f   : > { %460 = dma.done.wait (%p549_p8), %s126_s5, 128  }
  0x20   : > { %462 = vsyncadd (%p549_p8), %s126_s5, 4294967168  ;;  %v491_v0 = vmov 0.0   ;;  %v154_v1 = vld [vmem:[%s129_s12] sm:$0xff]  ;;  %s217_s16 = scalar_lea.hbm %s624_s1, %s481_s9  ;;  %s147_s17 = scalar_lea.vmem [#allocation6], %s576_s3 }
  0x21   : > { %153 = vst [vmem:[#allocation2] sm:$0x1] %v491_v0  ;;  %v155_v2 = vmax.f32 %v154_v1, 1e-30  ;;  %s219_s18 = sshll.u32 %s147_s17, 4  ;;  %s221_s22 = sshll.u32 %s217_s16, 4  ;;  %s220_s18 = int_to_ptr.vmem [resolvable:$true] %s219_s18  ;;  %s222_s22 = int_to_ptr.hbm [resolvable:$true] %s221_s22 }
  0x22   : > { %s209_s23 = scalar_lea.sflag [#allocation5], %s576_s3  ;;  %s421_s24 = sshra.s32 %s222_s22, 4  ;;  %s422_s24 = int_to_ptr.hbm [resolvable:$true] %s421_s24 }
  0x23   : > { %v156_v3 = vmul.f32 4.1887903, %v155_v2  ;;  %s423_s25 = scalar_lea.hbm %s422_s24, 1  ;;  %s427_s28 = scalar_lea.hbm %s624_s1, 2 }
  0x24   : > { %p424_p4 = scmp.ne.s32.totalorder %s422_s24, %s423_s25  ;;  %p428_p7 = scmp.lt.s32.totalorder %s422_s24, %s624_s1 }
  0x25   : > { %369 = vlog2.f32 %v156_v3  ;;  %p429_p8 = scmp.lt.s32.totalorder %s427_s28, %s423_s25 }
  0x26   : > { %p425_p5 = pnand %p424_p4, %p553_p9 }
  0x27   : > { %p430_p10 = por %p429_p8, %p428_p7 }
  0x28   : > { %v193_v41 = vld [vmem:[#allocation2] sm:$0x1]  ;;  %p426_p6 = pneg %p425_p5 }
  0x2a   : > { %p431_p13 = pnand %p430_p10, %p426_p6 }
  0x2b   : > { %v370_v4 = vpop.eup %369 }
  0x2c   : > { %v158_v5 = vmul.f32 0.6931472, %v370_v4 }
  0x2e   : > { %v159_v6 = vmul.f32 -0.16666667, %v158_v5 }
  0x30   : > { %v160_v7 = vmul.f32 1.442695, %v159_v6 }
  0x32   : > { %371 = vpow2.f32 %v160_v7 }
  0x38   : > { %v372_v8 = vpop.eup %371 }
  0x39   : > { %v164_v9 = vmul.f32 0.49294, %v372_v8  ;;  %v163_v13 = vmul.f32 0.062182, %v372_v8  ;;  %v162_v23 = vmul.f32 %v372_v8, %v372_v8 }
  0x3b   : > { %v165_v10 = vadd.f32 1.6382, %v164_v9  ;;  %v171_v27 = vmul.f32 0.2137, %v162_v23 }
  0x3d   : > { %v166_v11 = vmul.f32 %v372_v8, %v165_v10  ;;  %v172_v30 = vadd.f32 1.0, %v171_v27 }
  0x3f   : > { %v167_v12 = vadd.f32 3.5876, %v166_v11  ;;  %v173_v31 = vmul.f32 -0.062182, %v172_v30 }
  0x41   : > { %v168_v14 = vmul.f32 %v372_v8, %v167_v12 }
  0x43   : > { %v169_v15 = vadd.f32 7.5957, %v168_v14 }
  0x45   : > { %v170_v16 = vmul.f32 %v169_v15, %v163_v13 }
  0x47   : > { %373 = vrcp.f32 %v170_v16  ;;  %v185_v19 = vand.u32 2147483648, %v170_v16  ;;  %vm179_vm0 = vweird.f32 %v170_v16  ;;  %v183_v21 = vand.u32 2147483647, %v170_v16 }
  0x49   : > { %v186_v24 = vor.u32 1.1754944e-38, %v185_v19  ;;  %vm184_vm3 = vcmp.eq.f32.partialorder %v183_v21, 8.507059e+37 }
  0x4d   : > { %v374_v17 = vpop.eup %373 }
  0x4e   : > { %v175_v18 = vmul.f32 %v374_v17, %v170_v16  ;;  %vm180_vm1 = vweird.f32 %v374_v17 }
  0x4f   : > { %vm181_vm2 = vmor %vm179_vm0, %vm180_vm1 }
  0x50   : > { %v176_v20 = vsub.f32 1.0, %v175_v18 }
  0x52   : > { %v177_v22 = vmul.f32 %v374_v17, %v176_v20 }
  0x54   : > { %v178_v25 = vadd.f32 %v374_v17, %v177_v22 }
  0x56   : > { %v182_v26 = vsel %vm181_vm2, %v374_v17, %v178_v25 }
  0x57   : > { %v187_v28 = vsel %vm184_vm3, %v186_v24, %v182_v26 }
  0x58   : > { %v189_v29 = vadd.f32 1.0, %v187_v28 }
  0x5a   : > { %375 = vlog2.f32 %v189_v29 }
  0x60   : > { %v376_v32 = vpop.eup %375 }
  0x61   : > { %v191_v33 = vmul.f32 0.6931472, %v376_v32 }
  0x63   : > { %v192_v34 = vmul.f32 %v191_v33, %v173_v31 }
  0x65   : > { %v194_v35 = vmul.f32 %v192_v34, %v154_v1 }
  0x67   : > { %v195_v36 = vrot.slane %v194_v35, 4 }
  0x69   : > { %v196_v37 = vadd.f32 %v195_v36, %v194_v35 }
  0x6b   : > { %v197_v38 = vrot.slane %v196_v37, 2 }
  0x6d   : > { %v198_v39 = vadd.f32 %v197_v38, %v196_v37 }
  0x6f   : > { %v199_v40 = vrot.slane %v198_v39, 1 }
  0x71   : > { %v200_v42 = vadd.f32 %v199_v40, %v198_v39 }
  0x73   : > { %v201_v43 = vadd.f32 %v200_v42, %v193_v41 }
  0x75   : > { %202 = vst [vmem:[#allocation2] sm:$0x1] %v201_v43 }
  0x7c   : > { %v206_v44 = vld [vmem:[#allocation2] sm:$0x1] }
  0x7d   : > { %207 = vst [vmem:[%s147_s17] sm:$0x1] %v206_v44 }
  0x7e   : > { %434 = shalt.err (!%p431_p13)
}
  0x7f   : > { %308 = dma.vmem_to_hbm [thread:$0]  (%p553_p9), %s220_s18, 16, %s222_s22, %s209_s23  }
  0x80 PF: > { %s233_s30 = sand.u32 1, %s469_s6   ;;  %p315_p0 = pnand %p299_p12, %p560_p11 }
  0x81   : > { %s234_s2 = scalar_lea.sflag [#allocation5], %s233_s30 }
  0x82   : > { %p316_p1 = pneg %p315_p0 }
  0x84   : > { %464 = dma.done.wait (%p316_p1), %s234_s2, 16  }
  0x85   : > { %466 = vsyncadd (%p316_p1), %s234_s2, 4294967280  ;;  %s17_s11 = sadd.s32 1, %s489_s11   ;;  %s629_s6 = smov %s473_s7 }
  0x86   : > { %p14_p2 = scmp.ge.s32.totalorder %s17_s11, 4   ;;  %s630_s7 = smov %s477_s8 }
  0x87   : > { %s631_s8 = smov %s558_s20  ;;  %s632_s9 = smov %s485_s10 }
  0x88   : > { %s633_s10 = smov %s635_s14  ;;  %16 = sbr.rel (!%p14_p2) target bundleno = 6 (0x6), region = 77 }
  0x8d   :  { %239 = vsyncpa [#allocation4], 1 }
  0x8e   :  { %241 = vsyncpa [#allocation4 + $0x1], 1 }
  0x8f   :  { %242 = vsyncpa [#allocation5], 1 }
  0x90   :  { %244 = vsyncpa [#allocation5 + $0x1], 1 }

</bundles_post_ra>
